<compile_context>
chip_gen: v5e
topology: v5e:2x2
jax: 0.10.0
libtpu: 0.0.40
codegen_flags: <defaults>
</compile_context>

<pallas_src>
import math

import jax
import jax.numpy as jnp
from jax import lax
from jax.experimental import pallas as pl
from jax.experimental.pallas import tpu as pltpu

_LANES = 128            # TPU vreg lane width
_MAX_TILE_ROWS = 4096   # 4096 x 128 f32 = 2 MiB per buffer (x3 arrays, x2 bufs)


def _fmix32(x):
    """murmur3 32-bit finalizer in int32 arithmetic.

    `(x >> k) & ((1 << (32 - k)) - 1)` is an exact logical right shift built
    only from signed ops, so it lowers identically on Mosaic-TPU and on the
    CPU interpreter (int32 multiply wraps mod 2**32, same bits as uint32).
    """
    x = x ^ ((x >> 16) & 0xFFFF)
    x = x * (-2048144789)          # 0x85EBCA6B as int32
    x = x ^ ((x >> 13) & 0x7FFFF)
    x = x * (-1028477387)          # 0xC2B2AE35 as int32
    x = x ^ ((x >> 16) & 0xFFFF)
    return x


def _unit_interval(bits):
    """int32 hash bits -> f32 uniform in [0, 1) from the low 23 bits."""
    return (bits & 0x7FFFFF).astype(jnp.float32) * (1.0 / (1 << 23))


def _nfp_forward_kernel(seed_ref, t_ref, x_ref, xt_ref, x0_ref):
    """One (batch, row-tile) grid step.

    seed_ref : SMEM (1,)  int32   (scalar prefetch)
    t_ref    : SMEM (B,)  float32 (scalar prefetch, per-batch timestep)
    x_ref    : VMEM (tr, 128) tile of x_1, native dtype
    xt_ref   : VMEM (tr, 128) tile of x_t, native dtype
    x0_ref   : VMEM (tr, 128) tile of x_0, native dtype
    """
    b = pl.program_id(0)
    c = pl.program_id(1)
    tr, lanes = x_ref.shape

    seed = seed_ref[0]
    tile_id = b * pl.num_programs(1) + c        # unique tile id within this call

    def hash_bits(shape, salt):
        # Unique per-element counter -> hash. Counter-based, so streams never
        # collide within one call regardless of grid shape. (int32 wrap only
        # matters past ~2^30 elements per call; acceptable for noise.)
        row = lax.broadcasted_iota(jnp.int32, shape, 0)
        col = lax.broadcasted_iota(jnp.int32, shape, 1)
        slot = (tile_id * tr + row) * lanes + col
        return _fmix32((slot * 2 + salt) ^ seed)

    # Box-Muller using BOTH branches: one (u1, u2) pair yields two normals,
    # halving PRNG draws and the log/sqrt chain per output element.
    if tr % 2 == 0:
        h = tr // 2
        u1 = 1.0 - _unit_interval(hash_bits((h, lanes), 0))    # (0, 1] -> log safe
        u2 = _unit_interval(hash_bits((h, lanes), 1))
        rad = jnp.sqrt(-2.0 * jnp.log(u1))
        theta = (2.0 * math.pi) * u2
        z = jnp.concatenate([rad * jnp.cos(theta), rad * jnp.sin(theta)], axis=0)
    else:
        # Odd row tile (only when the tile equals the full, odd row count):
        # fall back to the cos branch for the whole tile.
        u1 = 1.0 - _unit_interval(hash_bits((tr, lanes), 0))
        u2 = _unit_interval(hash_bits((tr, lanes), 1))
        z = jnp.sqrt(-2.0 * jnp.log(u1)) * jnp.cos((2.0 * math.pi) * u2)

    # Round x_0 to the output dtype FIRST and build x_t from the rounded value,
    # so the returned (x_t, x_0) pair is exactly self-consistent (matches the
    # PyTorch module, which works entirely in x.dtype).
    x0 = z.astype(x0_ref.dtype)
    x0_ref[...] = x0

    t = t_ref[b]                                # per-batch scalar timestep
    x0f = x0.astype(jnp.float32)
    x1f = x_ref[...].astype(jnp.float32)
    xt_ref[...] = (x0f + t * (x1f - x0f)).astype(xt_ref.dtype)  # == (1-t)*x0 + t*x1


def _row_tile(r, batch, sublane):
    """Balanced row tiling: minimal masked-row waste, dtype-aligned tiles."""
    num_tiles = max(1, -(-r // _MAX_TILE_ROWS))
    if batch == 1 and num_tiles == 1 and r >= 2 * sublane:
        num_tiles = 2            # keep both v7x TensorCores busy on batch-1 calls
    tr = -(-r // num_tiles)
    tr = -(-tr // sublane) * sublane
    if tr >= r:
        return r, 1              # block == full dim is always a legal block shape
    return tr, -(-r // tr)       # last tile may overhang; Pallas masks it


def nfp_forward(x, t, key, *, donate_x=False):
    """Pallas implementation of NFP.forward.

    Args:
      x: (B, ...) float array -- the clean data x_1 (any trailing shape).
      t: (B,) float array -- per-batch noise level in [0, 1].
      key: JAX PRNG key seeding the in-kernel noise generator.
      donate_x: if True, alias x's HBM buffer to the x_t output (only valid if
        the caller does not use x afterwards).

    Returns:
      (x_t, x_0), both with x's shape and dtype.
    """
    B = x.shape[0]
    n = math.prod(x.shape[1:])
    dtype = x.dtype
    sublane = {4: 8, 2: 16, 1: 32}.get(jnp.dtype(dtype).itemsize, 8)

    r = -(-n // _LANES)                       # 128-lane rows per batch element
    ragged = (r * _LANES != n)
    if ragged:
        # TODO(synk): slow path -- wrapper pad + slice adds extra HBM passes.
        xl = jnp.pad(x.reshape(B, n), ((0, 0), (0, r * _LANES - n)))
        xl = xl.reshape(B, r, _LANES)
    else:
        # Fast path: free trailing-dim reshape, no padding, no extra traffic.
        xl = x.reshape(B, r, _LANES)

    tr, num_tiles = _row_tile(r, B, sublane)

    seed = jax.random.randint(key, (1,), minval=0,
                              maxval=jnp.iinfo(jnp.int32).max, dtype=jnp.int32)
    t32 = jnp.asarray(t, dtype=jnp.float32).reshape(B)

    blk = pl.BlockSpec((None, tr, _LANES), lambda b, c, *_: (b, c, 0))
    grid = (B, num_tiles)

    kwargs = {}
    if donate_x:
        kwargs["input_output_aliases"] = {2: 0}   # x (3rd input) -> x_t output

    xt, x0 = pl.pallas_call(
        _nfp_forward_kernel,
        out_shape=(
            jax.ShapeDtypeStruct((B, r, _LANES), dtype),
            jax.ShapeDtypeStruct((B, r, _LANES), dtype),
        ),
        grid_spec=pltpu.PrefetchScalarGridSpec(
            num_scalar_prefetch=2,
            grid=grid,
            in_specs=[blk],
            out_specs=[blk, blk],
        ),
        compiler_params=pltpu.CompilerParams(
            dimension_semantics=("parallel", "parallel"),
            vmem_limit_bytes=32 * 1024 * 1024,
        ),
        **kwargs,
    )(seed, t32, xl)

    def _unflatten(a):
        if ragged:
            a = a.reshape(B, r * _LANES)[:, :n]
        return a.reshape(x.shape)

    return _unflatten(xt), _unflatten(x0)


if __name__ == "__main__":
    key = jax.random.PRNGKey(0)
    k_x, k_t, k_noise = jax.random.split(key, 3)

    B, S, D = 2, 8, 32
    x = jax.random.normal(k_x, (B, S, D), dtype=jnp.float32)
    # NFP.sample_timesteps draws uniform timesteps in [0, 1)
    t = jax.random.uniform(k_t, (B,), dtype=jnp.float32)

    xt, x0 = nfp_forward(x, t, k_noise)
    jax.block_until_ready((xt, x0))

    assert xt.shape == x.shape and x0.shape == x.shape
    assert xt.dtype == x.dtype and x0.dtype == x.dtype

    # x_t must satisfy the module's interpolation formula w.r.t. the returned x_0.
    t_b = t[:, None, None]
    xt_ref = (1.0 - t_b) * x0 + t_b * x
    assert jnp.allclose(xt, xt_ref, atol=1e-5), "interpolation mismatch"

    # On-chip noise should be ~N(0, 1).
    m = float(jnp.mean(x0))
    s = float(jnp.std(x0))
    assert abs(m) < 0.25 and 0.7 < s < 1.3, f"x0 stats off: mean={m}, std={s}"

    # Native-dtype path smoke test (bf16 in / bf16 out, no wrapper casts).
    xb = x.astype(jnp.bfloat16)
    xtb, x0b = nfp_forward(xb, t, k_noise)
    jax.block_until_ready((xtb, x0b))
    assert xtb.shape == xb.shape and xtb.dtype == jnp.bfloat16
    assert x0b.dtype == jnp.bfloat16

    # Ragged trailing-dim smoke test (n % 128 != 0 -> padded fallback path).
    xr = jax.random.normal(k_x, (B, 5, 10), dtype=jnp.float32)
    xtr, x0r = nfp_forward(xr, t, k_noise)
    jax.block_until_ready((xtr, x0r))
    assert xtr.shape == xr.shape and x0r.shape == xr.shape
    assert jnp.allclose(xtr, (1.0 - t_b) * x0r + t_b * xr, atol=1e-5)

    print("KERNEL_OK")
</pallas_src>

<mosaic_0001>
module attributes {stable_mosaic.version = 11 : i64} {
  func.func @_nfp_forward_kernel(%arg0: i32, %arg1: i32, %arg2: memref<1xi32, #tpu.memory_space<smem>>, %arg3: memref<2xf32, #tpu.memory_space<smem>>, %arg4: memref<1x2x128xf32, #tpu.memory_space<vmem>>, %arg5: memref<1x2x128xf32, #tpu.memory_space<vmem>>, %arg6: memref<1x2x128xf32, #tpu.memory_space<vmem>>) attributes {dimension_semantics = [#tpu.dimension_semantics<parallel>, #tpu.dimension_semantics<parallel>], iteration_bounds = array<i64: 2, 1>, scalar_prefetch = 2 : i64, scratch_operands = 0 : i64, tpu.core_type = #tpu.core_type<tc>, window_params = [{transform_indices = @transform_0, window_bounds = array<i64: 1, 2, 128>}, {transform_indices = @transform_1, window_bounds = array<i64: 1, 2, 128>}, {transform_indices = @transform_2, window_bounds = array<i64: 1, 2, 128>}]} {
    %c0 = arith.constant 0 : index
    %0 = memref.load %arg2[%c0] : memref<1xi32, #tpu.memory_space<smem>>
    %c1_i32 = arith.constant 1 : i32
    %1 = arith.muli %arg0, %c1_i32 : i32
    %2 = arith.addi %1, %arg1 : i32
    %3 = tpu.iota {dimensions = array<i32: 0>} : vector<1x128xi32>
    %4 = tpu.iota {dimensions = array<i32: 1>} : vector<1x128xi32>
    %c2_i32 = arith.constant 2 : i32
    %5 = arith.muli %2, %c2_i32 : i32
    %6 = vector.broadcast %5 : i32 to vector<1x128xi32>
    %7 = arith.addi %6, %3 : vector<1x128xi32>
    %c128_i32 = arith.constant 128 : i32
    %8 = vector.broadcast %c128_i32 : i32 to vector<1x128xi32>
    %9 = arith.muli %7, %8 : vector<1x128xi32>
    %10 = arith.addi %9, %4 : vector<1x128xi32>
    %c2_i32_0 = arith.constant 2 : i32
    %11 = vector.broadcast %c2_i32_0 : i32 to vector<1x128xi32>
    %12 = arith.muli %10, %11 : vector<1x128xi32>
    %c0_i32 = arith.constant 0 : i32
    %13 = vector.broadcast %c0_i32 : i32 to vector<1x128xi32>
    %14 = arith.addi %12, %13 : vector<1x128xi32>
    %15 = vector.broadcast %0 : i32 to vector<1x128xi32>
    %16 = arith.xori %14, %15 : vector<1x128xi32>
    %c16_i32 = arith.constant 16 : i32
    %17 = vector.broadcast %c16_i32 : i32 to vector<1x128xi32>
    %18 = arith.shrsi %16, %17 : vector<1x128xi32>
    %c65535_i32 = arith.constant 65535 : i32
    %19 = vector.broadcast %c65535_i32 : i32 to vector<1x128xi32>
    %20 = arith.andi %18, %19 : vector<1x128xi32>
    %21 = arith.xori %16, %20 : vector<1x128xi32>
    %c-2048144789_i32 = arith.constant -2048144789 : i32
    %22 = vector.broadcast %c-2048144789_i32 : i32 to vector<1x128xi32>
    %23 = arith.muli %21, %22 : vector<1x128xi32>
    %c13_i32 = arith.constant 13 : i32
    %24 = vector.broadcast %c13_i32 : i32 to vector<1x128xi32>
    %25 = arith.shrsi %23, %24 : vector<1x128xi32>
    %c524287_i32 = arith.constant 524287 : i32
    %26 = vector.broadcast %c524287_i32 : i32 to vector<1x128xi32>
    %27 = arith.andi %25, %26 : vector<1x128xi32>
    %28 = arith.xori %23, %27 : vector<1x128xi32>
    %c-1028477387_i32 = arith.constant -1028477387 : i32
    %29 = vector.broadcast %c-1028477387_i32 : i32 to vector<1x128xi32>
    %30 = arith.muli %28, %29 : vector<1x128xi32>
    %c16_i32_1 = arith.constant 16 : i32
    %31 = vector.broadcast %c16_i32_1 : i32 to vector<1x128xi32>
    %32 = arith.shrsi %30, %31 : vector<1x128xi32>
    %c65535_i32_2 = arith.constant 65535 : i32
    %33 = vector.broadcast %c65535_i32_2 : i32 to vector<1x128xi32>
    %34 = arith.andi %32, %33 : vector<1x128xi32>
    %35 = arith.xori %30, %34 : vector<1x128xi32>
    %c8388607_i32 = arith.constant 8388607 : i32
    %36 = vector.broadcast %c8388607_i32 : i32 to vector<1x128xi32>
    %37 = arith.andi %35, %36 : vector<1x128xi32>
    %38 = arith.sitofp %37 : vector<1x128xi32> to vector<1x128xf32>
    %cst = arith.constant 1.1920929E-7 : f32
    %39 = vector.broadcast %cst : f32 to vector<1x128xf32>
    %40 = arith.mulf %38, %39 : vector<1x128xf32>
    %cst_3 = arith.constant 1.000000e+00 : f32
    %41 = vector.broadcast %cst_3 : f32 to vector<1x128xf32>
    %42 = arith.subf %41, %40 : vector<1x128xf32>
    %43 = tpu.iota {dimensions = array<i32: 0>} : vector<1x128xi32>
    %44 = tpu.iota {dimensions = array<i32: 1>} : vector<1x128xi32>
    %c2_i32_4 = arith.constant 2 : i32
    %45 = arith.muli %2, %c2_i32_4 : i32
    %46 = vector.broadcast %45 : i32 to vector<1x128xi32>
    %47 = arith.addi %46, %43 : vector<1x128xi32>
    %c128_i32_5 = arith.constant 128 : i32
    %48 = vector.broadcast %c128_i32_5 : i32 to vector<1x128xi32>
    %49 = arith.muli %47, %48 : vector<1x128xi32>
    %50 = arith.addi %49, %44 : vector<1x128xi32>
    %c2_i32_6 = arith.constant 2 : i32
    %51 = vector.broadcast %c2_i32_6 : i32 to vector<1x128xi32>
    %52 = arith.muli %50, %51 : vector<1x128xi32>
    %c1_i32_7 = arith.constant 1 : i32
    %53 = vector.broadcast %c1_i32_7 : i32 to vector<1x128xi32>
    %54 = arith.addi %52, %53 : vector<1x128xi32>
    %55 = vector.broadcast %0 : i32 to vector<1x128xi32>
    %56 = arith.xori %54, %55 : vector<1x128xi32>
    %c16_i32_8 = arith.constant 16 : i32
    %57 = vector.broadcast %c16_i32_8 : i32 to vector<1x128xi32>
    %58 = arith.shrsi %56, %57 : vector<1x128xi32>
    %c65535_i32_9 = arith.constant 65535 : i32
    %59 = vector.broadcast %c65535_i32_9 : i32 to vector<1x128xi32>
    %60 = arith.andi %58, %59 : vector<1x128xi32>
    %61 = arith.xori %56, %60 : vector<1x128xi32>
    %c-2048144789_i32_10 = arith.constant -2048144789 : i32
    %62 = vector.broadcast %c-2048144789_i32_10 : i32 to vector<1x128xi32>
    %63 = arith.muli %61, %62 : vector<1x128xi32>
    %c13_i32_11 = arith.constant 13 : i32
    %64 = vector.broadcast %c13_i32_11 : i32 to vector<1x128xi32>
    %65 = arith.shrsi %63, %64 : vector<1x128xi32>
    %c524287_i32_12 = arith.constant 524287 : i32
    %66 = vector.broadcast %c524287_i32_12 : i32 to vector<1x128xi32>
    %67 = arith.andi %65, %66 : vector<1x128xi32>
    %68 = arith.xori %63, %67 : vector<1x128xi32>
    %c-1028477387_i32_13 = arith.constant -1028477387 : i32
    %69 = vector.broadcast %c-1028477387_i32_13 : i32 to vector<1x128xi32>
    %70 = arith.muli %68, %69 : vector<1x128xi32>
    %c16_i32_14 = arith.constant 16 : i32
    %71 = vector.broadcast %c16_i32_14 : i32 to vector<1x128xi32>
    %72 = arith.shrsi %70, %71 : vector<1x128xi32>
    %c65535_i32_15 = arith.constant 65535 : i32
    %73 = vector.broadcast %c65535_i32_15 : i32 to vector<1x128xi32>
    %74 = arith.andi %72, %73 : vector<1x128xi32>
    %75 = arith.xori %70, %74 : vector<1x128xi32>
    %c8388607_i32_16 = arith.constant 8388607 : i32
    %76 = vector.broadcast %c8388607_i32_16 : i32 to vector<1x128xi32>
    %77 = arith.andi %75, %76 : vector<1x128xi32>
    %78 = arith.sitofp %77 : vector<1x128xi32> to vector<1x128xf32>
    %cst_17 = arith.constant 1.1920929E-7 : f32
    %79 = vector.broadcast %cst_17 : f32 to vector<1x128xf32>
    %80 = arith.mulf %78, %79 : vector<1x128xf32>
    %81 = math.log %42 : vector<1x128xf32>
    %cst_18 = arith.constant -2.000000e+00 : f32
    %82 = vector.broadcast %cst_18 : f32 to vector<1x128xf32>
    %83 = arith.mulf %82, %81 : vector<1x128xf32>
    %84 = math.sqrt %83 : vector<1x128xf32>
    %cst_19 = arith.constant 6.28318548 : f32
    %85 = vector.broadcast %cst_19 : f32 to vector<1x128xf32>
    %86 = arith.mulf %85, %80 : vector<1x128xf32>
    %87 = math.cos %86 : vector<1x128xf32>
    %88 = arith.mulf %84, %87 : vector<1x128xf32>
    %89 = math.sin %86 : vector<1x128xf32>
    %90 = arith.mulf %84, %89 : vector<1x128xf32>
    %91 = tpu.concatenate %88, %90 in 0 : vector<1x128xf32>, vector<1x128xf32> -> vector<2x128xf32>
    %c0_20 = arith.constant 0 : index
    %c0_21 = arith.constant 0 : index
    %c0_22 = arith.constant 0 : index
    %92 = vector.load %arg6[%c0_20, %c0_21, %c0_22] : memref<1x2x128xf32, #tpu.memory_space<vmem>>, vector<1x2x128xf32>
    %93 = vector.shape_cast %92 : vector<1x2x128xf32> to vector<2x128xf32>
    %94 = vector.shape_cast %91 : vector<2x128xf32> to vector<1x2x128xf32>
    tpu.vector_store %arg6[%c0_20, %c0_21, %c0_22], %94 {strides = array<i32>} : memref<1x2x128xf32, #tpu.memory_space<vmem>>, vector<1x2x128xf32>,
    %95 = arith.index_cast %arg0 : i32 to index
    %96 = memref.load %arg3[%95] : memref<2xf32, #tpu.memory_space<smem>>
    %c0_23 = arith.constant 0 : index
    %c0_24 = arith.constant 0 : index
    %c0_25 = arith.constant 0 : index
    %97 = vector.load %arg4[%c0_23, %c0_24, %c0_25] : memref<1x2x128xf32, #tpu.memory_space<vmem>>, vector<1x2x128xf32>
    %98 = vector.shape_cast %97 : vector<1x2x128xf32> to vector<2x128xf32>
    %99 = arith.subf %98, %91 : vector<2x128xf32>
    %100 = vector.broadcast %96 : f32 to vector<2x128xf32>
    %101 = arith.mulf %100, %99 : vector<2x128xf32>
    %102 = arith.addf %91, %101 : vector<2x128xf32>
    %c0_26 = arith.constant 0 : index
    %c0_27 = arith.constant 0 : index
    %c0_28 = arith.constant 0 : index
    %103 = vector.load %arg5[%c0_26, %c0_27, %c0_28] : memref<1x2x128xf32, #tpu.memory_space<vmem>>, vector<1x2x128xf32>
    %104 = vector.shape_cast %103 : vector<1x2x128xf32> to vector<2x128xf32>
    %105 = vector.shape_cast %102 : vector<2x128xf32> to vector<1x2x128xf32>
    tpu.vector_store %arg5[%c0_26, %c0_27, %c0_28], %105 {strides = array<i32>} : memref<1x2x128xf32, #tpu.memory_space<vmem>>, vector<1x2x128xf32>,
    return
  }
  func.func @transform_0(%arg0: i32, %arg1: i32, %arg2: memref<1xi32, #tpu.memory_space<smem>>, %arg3: memref<2xf32, #tpu.memory_space<smem>>) -> (i32, i32, i32) {
    %c0_i32 = arith.constant 0 : i32
    %c0_i32_0 = arith.constant 0 : i32
    return %arg0, %arg1, %c0_i32 : i32, i32, i32
  }
  func.func @transform_1(%arg0: i32, %arg1: i32, %arg2: memref<1xi32, #tpu.memory_space<smem>>, %arg3: memref<2xf32, #tpu.memory_space<smem>>) -> (i32, i32, i32) {
    %c0_i32 = arith.constant 0 : i32
    %c0_i32_0 = arith.constant 0 : i32
    return %arg0, %arg1, %c0_i32 : i32, i32, i32
  }
  func.func @transform_2(%arg0: i32, %arg1: i32, %arg2: memref<1xi32, #tpu.memory_space<smem>>, %arg3: memref<2xf32, #tpu.memory_space<smem>>) -> (i32, i32, i32) {
    %c0_i32 = arith.constant 0 : i32
    %c0_i32_0 = arith.constant 0 : i32
    return %arg0, %arg1, %c0_i32 : i32, i32, i32
  }
}

</mosaic_0001>

<bundles_post_ra>
// kernel: tpu_custom_call.1
= control target key start
LH: loop header
LB: loop body
LE: loop exit
PB: predicated region body
PF: predicated region fallthrough
CT: control target
= control target key end

     0   :  { %s1006_s20 = smov [#allocation4]   ;;  %s1262_s0 = inlined_call_operand.<no memory space> [shape: s32[1], index: 0, kind: input, shape index: {}]   ;;  %s1263_s1 = inlined_call_operand.vmem [shape: f32[2], index: 1, kind: input, shape index: {}]   ;;  %s1264_s2 = inlined_call_operand.hbm [shape: f32[2,2,128], index: 2, kind: input, shape index: {}]   ;;  %s1265_s3 = inlined_call_operand.hbm [shape: f32[2,2,128], index: 3, kind: output, shape index: {0}]   ;;  %s1266_s4 = inlined_call_operand.hbm [shape: f32[2,2,128], index: 4, kind: output, shape index: {1}]  }
   0x1   :  { %10 = sst [smem:[#allocation3]] %s1262_s0  ;;  %s12_s19 = sshll.u32 %s1263_s1, 4  ;;  %s13_s19 = int_to_ptr.vmem [resolvable:$true] %s12_s19 }
   0x2   :  { %15 = dma.vmem_to_smem %s13_s19, 16, %s1006_s20, [#allocation2] }
   0x3   :  { %968 = dma.done.wait [#allocation2], 16 }
   0x4   :  { %969 = vsyncadd [#allocation2], 4294967280 }
   0x5   :  { %18 = sfence }
   0x6   :  { %19 = vsyncpa [#allocation6], 0 }
   0x7   :  { %21 = vsyncpa [#allocation6 + $0x1], 0 }
   0x8   :  { %22 = vsyncpa [#allocation7], 0 }
   0x9   :  { %24 = vsyncpa [#allocation7 + $0x1], 0 }
   0xa   :  { %25 = vsyncpa [#allocation10], 0 }
   0xb   :  { %27 = vsyncpa [#allocation10 + $0x1], 0  ;;  %s1045_s21 = smov 0   ;;  %s1047_s22 = smov 0  }
   0xc   :  { %s1049_s0 = smov 0   ;;  %s1051_s23 = smov 0  }
   0xd   :  { %s1053_s1 = smov 0   ;;  %s1055_s24 = smov 0  }
   0xe LB: > { %s738_s25 = sadd.s32 4294967295, %s1004_s24   ;;  %s739_s26 = sadd.s32 4294967294, %s1004_s24   ;;  %s1004_s24 = sphi %s1055_s24, %s33_s24   ;;  %s1000_s1 = sphi %s1053_s1, %s1275_s1   ;;  %s996_s23 = sphi %s1051_s23, %s1274_s23   ;;  %s992_s0 = sphi %s1049_s0, %s1273_s0   ;;  %s988_s22 = sphi %s1047_s22, %s1272_s22   ;;  %s984_s21 = sphi %s1045_s21, %s1271_s21  }
   0xf   : > { %s45_s27 = sadd.s32 1, %s1000_s1  ;;  %s54_s28 = sadd.s32 1, %s992_s0 }
  0x10   : > { %p47_p0 = scmp.ge.s32.totalorder %s45_s27, 2  ;;  %p61_p1 = scmp.ne.s32.totalorder %s992_s0, %s988_s22 }
  0x11   : > { %p62_p2 = scmp.eq.s32.totalorder %s1004_s24, 0  ;;  %p67_p3 = scmp.ne.s32.totalorder %s988_s22, %s984_s21 }
  0x12   : > { %s1277_s27 = smov (%p47_p0, %s45_s27), 0  ;;  %p68_p5 = scmp.eq.s32.totalorder %s738_s25, 0 }
  0x13   : > { %p1086_p4 = por %p62_p2, %p61_p1  ;;  %s49_s30 = ssub.s32 %s1000_s1, %s1277_s27 }
  0x14   : > { %p93_p6 = scmp.eq.s32.totalorder %s738_s25, 1  ;;  %p52_p7 = scmp.eq.s32.totalorder %s49_s30, 0 }
  0x15   : > { %p1092_p8 = por %p68_p5, %p67_p3  ;;  %p99_p10 = scmp.eq.s32.totalorder %s739_s26, 1 }
  0x16   : > { %p1096_p9 = por %p93_p6, %p61_p1  ;;  %p741_p12 = scmp.ge.s32.totalorder %s1004_s24, 2 }
  0x17   : > { %s1101_s7 = scalar_select %p52_p7, %s992_s0, %s54_s28  }
  0x18   : > { %p1103_p11 = por %p99_p10, %p67_p3  ;;  %p784_p13 = scmp.lt.s32.totalorder %s1004_s24, 2 }
  0x19   : > { %s147_s9 = sand.u32 1, %s992_s0   ;;  %s743_s11 = sshll.u32 %s1000_s1, 1 }
  0x1a   : > { %s742_s10 = sshll.u32 %s147_s9, 1  ;;  %s156_s14 = scalar_lea.hbm %s1264_s2, %s743_s11 }
  0x1b   : > { %s151_s15 = scalar_lea.vmem [#allocation5], %s742_s10  ;;  %s158_s17 = sshll.u32 %s156_s14, 4  ;;  %s159_s17 = int_to_ptr.hbm [resolvable:$true] %s158_s17 }
  0x1c   : > { %s160_s16 = sshll.u32 %s151_s15, 4  ;;  %p774_p0 = pnand %p784_p13, %p1086_p4  ;;  %s161_s16 = int_to_ptr.vmem [resolvable:$true] %s160_s16 }
  0x1d   : > { %p744_p1 = scmp.ge.s32.totalorder %s1004_s24, 1  ;;  %p165_p2 = scmp.lt.s32.totalorder %s1004_s24, 3 }
  0x1e   : > { %s148_s18 = scalar_lea.sflag [#allocation6], %s147_s9 }
  0x1f   : > { %776 = dma.hbm_to_vmem [thread:$0]  (!%p774_p0), %s159_s17, 32, %s161_s16, %s148_s18  }
  0x20   : > { %p166_p3 = pnand %p744_p1, %p165_p2 }
  0x21   : > { %s1119_s19 = sand.u32 (!%p166_p3), 1, %s988_s22  }
  0x22   : > { %169 = sbr.rel (%p166_p3) target bundleno = 196 (0xc4), region = 24  ;;  %s1122_s20 = sshll.u32 (!%p166_p3), %s1119_s19, 1 }
  0x23   : > { %s172_s25 = scalar_lea.sflag (!%p166_p3), [#allocation6], %s1119_s19  ;;  %s175_s26 = scalar_lea.vmem (!%p166_p3), [#allocation5], %s1122_s20 }
  0x27   : > { %971 = dma.done.wait (%p1092_p8), %s172_s25, 32  }
  0x28   : > { %973 = vsyncadd (%p1092_p8), %s172_s25, 4294967264  ;;  %v204_v0 = vlaneseq  ;;  %s1131_s28 = sshll.u32 %s996_s23, 1  ;;  %s202_s29 = sld [smem:[#allocation3]]  ;;  %v1007_v41 = vmov 683565275  }
  0x29   : > { %v209_v1 = vstv %s1131_s28  ;;  %v1008_v43 = vmov 2475754826   ;;  %v1009_v45 = vmov 2131351028   ;;  %v1010_v47 = vmov 2102212464   ;;  %s619_s10 = scalar_lea.hbm %s1266_s4, %s1131_s28  ;;  %s604_s15 = scalar_lea.hbm %s1265_s3, %s1131_s28 }
  0x2a   : > { %v205_v2 = vshrl.u32 %v204_v0, 7  ;;  %v207_v3 = vand.u32 127, %v204_v0  ;;  %v1011_v49 = vmov 920167782   ;;  %v1012_v56 = vmov 1326507024  }
  0x2b   : > { %s1190_s30 = sld [smem:[#allocation4 + %s996_s23]]  ;;  %s201_s11 = scalar_lea.vmem [#allocation9], %s1122_s20 }
  0x2c   : > { %v210_v4 = vadd.s32 %v209_v1, %v205_v2  ;;  %s1197_s12 = sshll.u32 %s201_s11, 4  ;;  %s1199_s23 = sshll.u32 %s619_s10, 4  ;;  %s622_s12 = int_to_ptr.vmem [resolvable:$true] %s1197_s12  ;;  %s624_s23 = int_to_ptr.hbm [resolvable:$true] %s1199_s23 }
  0x2d   : > { %s194_s16 = scalar_lea.vmem [#allocation8], %s1122_s20  ;;  %s1213_s18 = sshll.u32 %s604_s15, 4  ;;  %s609_s18 = int_to_ptr.hbm [resolvable:$true] %s1213_s18 }
  0x2e   : > { %v211_v5 = vmul.u32 128, %v210_v4  ;;  %v214_v8 = vstv %s202_s29  ;;  %s1211_s17 = sshll.u32 %s194_s16, 4  ;;  %s593_s25 = scalar_lea.sflag [#allocation10], %s1119_s19  ;;  %s607_s17 = int_to_ptr.vmem [resolvable:$true] %s1211_s17 }
  0x2f   : > { %s902_s29 = sshra.s32 %s624_s23, 4  ;;  %s908_s9 = scalar_lea.hbm %s1266_s4, 4  ;;  %s903_s29 = int_to_ptr.hbm [resolvable:$true] %s902_s29 }
  0x30   : > { %v212_v6 = vadd.s32 %v211_v5, %v207_v3  ;;  %p909_p7 = scmp.lt.s32.totalorder %s903_s29, %s1266_s4 }
  0x32   : > { %v213_v7 = vmul.u32 2, %v212_v6 }
  0x34   : > { %v215_v9 = vxor.u32 %v214_v8, %v213_v7  ;;  %v231_v10 = vadd.s32 1, %v213_v7 }
  0x36   : > { %v232_v11 = vxor.u32 %v231_v10, %v214_v8  ;;  %v749_v20 = vshrl.u32 %v215_v9, 16 }
  0x38   : > { %v752_v12 = vshrl.u32 %v232_v11, 16  ;;  %v218_v23 = vxor.u32 %v749_v20, %v215_v9 }
  0x3a   : > { %v235_v13 = vxor.u32 %v752_v12, %v232_v11  ;;  %v219_v26 = vmul.u32 2246822507, %v218_v23 }
  0x3c   : > { %v236_v14 = vmul.u32 2246822507, %v235_v13  ;;  %v750_v29 = vshrl.u32 %v219_v26, 13 }
  0x3e   : > { %v753_v15 = vshrl.u32 %v236_v14, 13  ;;  %v222_v33 = vxor.u32 %v750_v29, %v219_v26 }
  0x40   : > { %v239_v16 = vxor.u32 %v753_v15, %v236_v14  ;;  %v223_v36 = vmul.u32 3266489909, %v222_v33 }
  0x42   : > { %v240_v17 = vmul.u32 3266489909, %v239_v16  ;;  %v751_v51 = vshrl.u32 %v223_v36, 16 }
  0x44   : > { %v754_v18 = vshrl.u32 %v240_v17, 16  ;;  %v226_v2 = vxor.u32 %v751_v51, %v223_v36 }
  0x46   : > { %v243_v19 = vxor.u32 %v754_v18, %v240_v17  ;;  %v227_v15 = vand.u32 8388607, %v226_v2 }
  0x48   : > { %v244_v21 = vand.u32 8388607, %v243_v19 }
  0x4a   : > { %v245_v22 = vcvt.s32.f32 %v244_v21 }
  0x4c   : > { %v246_v24 = vmul.f32 1.1920929e-07, %v245_v22 }
  0x4e   : > { %v1134_v25 = vmul.f32 6.2831855, %v246_v24 }
  0x50   : > { %v266_v27 = vand.u32 2139095040, %v1134_v25  ;;  %v263_v30 = vand.u32 2147483647, %v1134_v25  ;;  %vm265_vm12 = vcmp.lt.s32.totalorder %v1134_v25, 0 }
  0x52   : > { %v267_v28 = vshrl.u32 %v266_v27, 23  ;;  %v270_v34 = vand.u32 8388607, %v263_v30  ;;  %v228_v27 = vcvt.s32.f32 %v227_v15  ;;  %vm264_vm13 = vcmp.le.f32.partialorder %v263_v30, 0.7853982 }
  0x54   : > { %v755_v31 = vadd.s32 4294967169, %v267_v28  ;;  %v271_v38 = vor.u32 8388608, %v270_v34  ;;  %v229_v51 = vmul.f32 1.1920929e-07, %v228_v27 }
  0x56   : > { %v273_v32 = vadd.s32 1, %v755_v31  ;;  %v1143_v58 = vshll.u32 %v271_v38, 8 }
  0x58   : > { %vm274_vm0 = vcmp.gt.s32.totalorder %v273_v32, 0  ;;  %v312_v7 = vand.u32 65535, %v1143_v58  ;;  %v313_v8 = vshrl.u32 %v1143_v58, 16 }
  0x59   : > { %v275_v35 = vsel %vm274_vm0, %v273_v32, 0 }
  0x5a   : > { %v277_v37 = vand.u32 31, %v275_v35  ;;  %v1140_v39 = vshrl.u32 %v275_v35, 5  ;;  %v1013_v35 = vmov 0  }
  0x5c   : > { %v278_v40 = vsub.s32 32, %v277_v37  ;;  %v280_v42 = vshll.u32 %v1007_v41, %v277_v37  ;;  %v283_v44 = vshll.u32 %v1008_v43, %v277_v37  ;;  %v286_v46 = vshll.u32 %v1009_v45, %v277_v37 }
  0x5d   : > { %v289_v48 = vshll.u32 %v1010_v47, %v277_v37  ;;  %v292_v50 = vshll.u32 %v1011_v49, %v277_v37  ;;  %vm295_vm1 = vcmp.lt.s32.totalorder %v1140_v39, 1  ;;  %vm298_vm2 = vcmp.lt.s32.totalorder %v1140_v39, 4 }
  0x5e   : > { %v281_v52 = vshrl.u32 %v1008_v43, %v278_v40  ;;  %v284_v53 = vshrl.u32 %v1009_v45, %v278_v40  ;;  %v287_v54 = vshrl.u32 %v1010_v47, %v278_v40  ;;  %v290_v55 = vshrl.u32 %v1011_v49, %v278_v40 }
  0x5f   : > { %v293_v57 = vshrl.u32 %v1012_v56, %v278_v40  ;;  %vm297_vm3 = vcmp.lt.s32.totalorder %v1140_v39, 3  ;;  %vm296_vm4 = vcmp.lt.s32.totalorder %v1140_v39, 2  ;;  %v279_v16 = vshrl.u32 %v1007_v41, %v278_v40 }
  0x60   : > { %v282_v59 = vor.u32 %v281_v52, %v280_v42  ;;  %v285_v60 = vor.u32 %v284_v53, %v283_v44  ;;  %v288_v61 = vor.u32 %v287_v54, %v286_v46  ;;  %v291_v62 = vor.u32 %v290_v55, %v289_v48 }
  0x61   : > { %v294_v63 = vor.u32 %v293_v57, %v292_v50 }
  0x62   : > { %v303_v0 = vsel %vm295_vm1, %v282_v59, %v285_v60  ;;  %v307_v1 = vsel %vm295_vm1, %v285_v60, %v288_v61  ;;  %v304_v3 = vsel %vm298_vm2, %v291_v62, 920167782  ;;  %v299_v31 = vsel %vm295_vm1, %v279_v16, %v282_v59 }
  0x63   : > { %v308_v4 = vsel %vm298_vm2, %v294_v63, 1326507024  ;;  %v305_v5 = vsel %vm297_vm3, %v288_v61, %v304_v3  ;;  %v300_v34 = vsel %vm298_vm2, %v288_v61, 2102212464  ;;  %v230_v59 = vsub.f32 1.0, %v229_v51 }
  0x64   : > { %v309_v6 = vsel %vm297_vm3, %v291_v62, %v308_v4  ;;  %v306_v9 = vsel %vm296_vm4, %v303_v0, %v305_v5  ;;  %v301_v45 = vsel %vm297_vm3, %v285_v60, %v300_v34 }
  0x65   : > { %v310_v10 = vsel %vm296_vm4, %v307_v1, %v309_v6  ;;  %v336_v13 = vand.u32 65535, %v306_v9  ;;  %v337_v14 = vshrl.u32 %v306_v9, 16  ;;  %v302_v54 = vsel %vm296_vm4, %v299_v31, %v301_v45 }
  0x66   : > { %v314_v11 = vand.u32 65535, %v310_v10  ;;  %v315_v12 = vshrl.u32 %v310_v10, 16  ;;  %v356_v61 = vmul.u32 %v1143_v58, %v302_v54  ;;  %842 = vlog2.f32 %v230_v59 }
  0x67   : > { %v338_v20 = vmul.u32 %v336_v13, %v312_v7  ;;  %v339_v21 = vmul.u32 %v337_v14, %v312_v7  ;;  %v340_v22 = vmul.u32 %v336_v13, %v313_v8  ;;  %v341_v28 = vmul.u32 %v337_v14, %v313_v8 }
  0x68   : > { %v316_v17 = vmul.u32 %v314_v11, %v312_v7  ;;  %v317_v18 = vmul.u32 %v315_v12, %v312_v7  ;;  %v318_v19 = vmul.u32 %v314_v11, %v313_v8  ;;  %v319_v23 = vmul.u32 %v315_v12, %v313_v8 }
  0x69   : > { %v342_v29 = vshll.u32 %v339_v21, 16  ;;  %v344_v33 = vshll.u32 %v340_v22, 16  ;;  %v343_v43 = vshrl.u32 %v339_v21, 16  ;;  %v345_v49 = vshrl.u32 %v340_v22, 16 }
  0x6a   : > { %v320_v24 = vshll.u32 %v317_v18, 16  ;;  %v322_v26 = vshll.u32 %v318_v19, 16  ;;  %v321_v38 = vshrl.u32 %v317_v18, 16  ;;  %v323_v46 = vshrl.u32 %v318_v19, 16 }
  0x6b   : > { %vm346_vm6 = vc.u32 %v338_v20, %v342_v29  ;;  %v348_v37 = vadd.s32 %v342_v29, %v338_v20 }
  0x6c   : > { %vm324_vm5 = vc.u32 %v316_v17, %v320_v24  ;;  %v326_v32 = vadd.s32 %v320_v24, %v316_v17  ;;  %v347_v41 = vsel %vm346_vm6, 1, %v1013_v35  ;;  %v843_v2 = vpop.eup %842  ;;  %vm406_vm6 = vweird.f32 %v1134_v25 }
  0x6d   : > { %v325_v36 = vsel %vm324_vm5, 1, %v1013_v35  ;;  %v349_v44 = vadd.s32 %v347_v41, %v341_v28  ;;  %vm350_vm8 = vc.u32 %v348_v37, %v344_v33  ;;  %v352_v53 = vadd.s32 %v348_v37, %v344_v33 }
  0x6e   : > { %v327_v40 = vadd.s32 %v325_v36, %v319_v23  ;;  %vm328_vm7 = vc.u32 %v326_v32, %v322_v26  ;;  %v351_v48 = vsel %vm350_vm8, 1, %v1013_v35  ;;  %v248_v5 = vmul.f32 0.6931472, %v843_v2 }
  0x6f   : > { %v329_v42 = vsel %vm328_vm7, 1, %v1013_v35  ;;  %v353_v50 = vadd.s32 %v351_v48, %v349_v44  ;;  %vm577_vm7 = vcmask 1040384  }
  0x70   : > { %v331_v47 = vadd.s32 %v329_v42, %v327_v40  ;;  %v1175_v7 = vmul.f32 -2.0, %v248_v5 }
  0x71   : > { %v354_v55 = vadd.s32 %v353_v50, %v343_v43 }
  0x72   : > { %v332_v52 = vadd.s32 %v331_v47, %v321_v38  ;;  %844 = vrsqrt.f32 %v1175_v7  ;;  %vm257_vm14 = vcmp.eq.f32.partialorder %v1175_v7, inf  ;;  %vm259_vm1 = vcmp.eq.f32.partialorder %v1175_v7, 0.0 }
  0x73   : > { %v355_v57 = vadd.s32 %v354_v55, %v345_v49 }
  0x74   : > { %v333_v56 = vadd.s32 %v332_v52, %v323_v46 }
  0x75   : > { %v359_v62 = vadd.s32 1, %v355_v57 }
  0x76   : > { %vm358_vm9 = vc.u32 %v333_v56, %v352_v53  ;;  %v357_v58 = vadd.s32 %v352_v53, %v333_v56  ;;  %v260_v53 = vand.u32 2147483648, %v1175_v7 }
  0x77   : > { %v360_v60 = vsel %vm358_vm9, %v359_v62, %v355_v57 }
  0x78   : > { %v361_v63 = vadd.s32 %v360_v60, %v356_v61  ;;  %v845_v16 = vpop.eup %844 }
  0x79   : > { %v251_v21 = vmul.f32 %v845_v16, %v1175_v7 }
  0x7a   : > { %v362_v0 = vadd.s32 536870912, %v361_v63 }
  0x7b   : > { %v252_v24 = vmul.f32 %v845_v16, %v251_v21 }
  0x7c   : > { %v363_v1 = vshrl.u32 %v362_v0, 30 }
  0x7d   : > { %v253_v29 = vmul.f32 0.5, %v252_v24 }
  0x7e   : > { %v364_v3 = vshll.u32 %v363_v1, 30  ;;  %v387_v26 = vsub.s32 4, %v363_v1 }
  0x7f   : > { %v254_v37 = vsub.f32 1.5, %v253_v29 }
  0x80   : > { %v365_v4 = vsub.s32 %v361_v63, %v364_v3  ;;  %v388_v31 = vsel %vm265_vm12, %v387_v26, %v363_v1 }
  0x81   : > { %v390_v34 = vsel %vm264_vm13, 0, %v388_v31  ;;  %v255_v44 = vmul.f32 %v845_v16, %v254_v37 }
  0x82   : > { %vm366_vm10 = vcmp.lt.s32.totalorder %v365_v4, 0  ;;  %v367_v39 = vsub.s32 0, %v365_v4  ;;  %v562_v41 = vadd.s32 3, %v390_v34  ;;  %v407_v30 = vand.u32 3, %v390_v34 }
  0x83   : > { %v256_v50 = vmul.f32 %v255_v44, %v1175_v7 }
  0x84   : > { %v368_v6 = vsel %vm366_vm10, %v367_v39, %v365_v4  ;;  %v563_v47 = vand.u32 3, %v562_v41  ;;  %vm412_vm15 = vcmp.eq.s32.totalorder %v407_v30, 2  ;;  %vm408_vm2 = vcmp.lt.s32.totalorder %v407_v30, 2  ;;  %v581_v39 = vld [vmem:[%s175_s26] sm:$0x3]  ;;  %s904_s26 = scalar_lea.hbm %s903_s29, 2 }
  0x85   : > { %v369_v8 = vclz %v368_v6  ;;  %v258_v56 = vsel %vm257_vm14, %v1175_v7, %v256_v50  ;;  %vm409_vm3 = vcmp.eq.s32.totalorder %v407_v30, 0  ;;  %v583_v7 = vstv %s1190_s30  ;;  %p905_p4 = scmp.ne.s32.totalorder %s903_s29, %s904_s26  ;;  %p910_p8 = scmp.lt.s32.totalorder %s908_s9, %s904_s26 }
  0x86   : > { %vm568_vm0 = vcmp.eq.s32.totalorder %v563_v47, 2  ;;  %vm565_vm4 = vcmp.eq.s32.totalorder %v563_v47, 0  ;;  %vm564_vm5 = vcmp.lt.s32.totalorder %v563_v47, 2  ;;  %v261_v62 = vsel %vm259_vm1, %v260_v53, %v258_v56 }
  0x87   : > { %v756_v9 = vadd.s32 4294967294, %v369_v8  ;;  %p906_p5 = pnand %p905_p4, %p1096_p9  ;;  %p911_p10 = por %p910_p8, %p909_p7 }
  0x89   : > { %vm757_vm11 = vcmp.lt.s32.totalorder %v756_v9, 0  ;;  %p907_p6 = pneg %p906_p5 }
  0x8a   : > { %v372_v10 = vsel %vm757_vm11, 0, %v756_v9 }
  0x8b   : > { %v373_v11 = vsub.s32 32, %v372_v10  ;;  %v374_v12 = vshll.u32 %v365_v4, %v372_v10  ;;  %v377_v13 = vsub.s32 4294967266, %v372_v10  ;;  %p912_p13 = pnand %p911_p10, %p907_p6 }
  0x8d   : > { %v375_v14 = vshrl.u32 %v357_v58, %v373_v11  ;;  %v378_v15 = vadd.s32 127, %v377_v13 }
  0x8f   : > { %v376_v17 = vor.u32 %v375_v14, %v374_v12  ;;  %v379_v18 = vshll.u32 %v378_v15, 23 }
  0x91   : > { %v380_v19 = vor.u32 4788187, %v379_v18  ;;  %v383_v20 = vcvt.s32.f32 %v376_v17 }
  0x93   : > { %v381_v22 = vand.u32 2147483647, %v380_v19 }
  0x95   : > { %v384_v23 = vmul.f32 %v383_v20, %v381_v22 }
  0x97   : > { %v385_v27 = vxor.u32 2147483648, %v384_v23 }
  0x99   : > { %v386_v28 = vsel %vm265_vm12, %v385_v27, %v384_v23 }
  0x9a   : > { %v389_v32 = vsel %vm264_vm13, %v1134_v25, %v386_v28 }
  0x9b   : > { %v391_v33 = vmul.f32 %v389_v32, %v389_v32 }
  0x9d   : > { %v392_v35 = vmul.f32 -0.001358992, %v391_v33  ;;  %v399_v36 = vmul.f32 -0.00019511016, %v391_v33 }
  0x9f   : > { %v393_v38 = vadd.f32 0.041655596, %v392_v35  ;;  %v400_v40 = vadd.f32 0.008332121, %v399_v36 }
  0xa1   : > { %v394_v42 = vmul.f32 %v393_v38, %v391_v33  ;;  %v401_v43 = vmul.f32 %v400_v40, %v391_v33 }
  0xa3   : > { %v395_v45 = vadd.f32 -0.4999988, %v394_v42  ;;  %v402_v46 = vadd.f32 -0.16666654, %v401_v43 }
  0xa5   : > { %v396_v48 = vmul.f32 %v395_v45, %v391_v33  ;;  %v403_v49 = vmul.f32 %v402_v46, %v391_v33 }
  0xa7   : > { %v397_v51 = vadd.f32 1.0, %v396_v48  ;;  %v404_v52 = vadd.f32 1.0, %v403_v49 }
  0xa9   : > { %v405_v54 = vmul.f32 %v404_v52, %v389_v32  ;;  %v413_v55 = vxor.u32 2147483648, %v397_v51 }
  0xab   : > { %v410_v57 = vxor.u32 2147483648, %v405_v54  ;;  %v414_v59 = vsel %vm412_vm15, %v413_v55, %v405_v54  ;;  %v570_v61 = vsel %vm568_vm0, %v413_v55, %v405_v54 }
  0xad   : > { %v411_v60 = vsel %vm409_vm3, %v397_v51, %v410_v57  ;;  %v567_v63 = vsel %vm565_vm4, %v397_v51, %v410_v57 }
  0xae   : > { %v415_v0 = vsel %vm408_vm2, %v411_v60, %v414_v59  ;;  %v571_v1 = vsel %vm564_vm5, %v567_v63, %v570_v61 }
  0xaf   : > { %v416_v2 = vsel %vm406_vm6, nan, %v415_v0  ;;  %v572_v3 = vsel %vm406_vm6, nan, %v571_v1 }
  0xb0   : > { %v417_v25 = vmul.f32 %v416_v2, %v261_v62  ;;  %v573_v4 = vmul.f32 %v572_v3, %v261_v62 }
  0xb2   : > { %v575_v5 = vrot.slane %v573_v4, 7 }
  0xb4   : > { %v578_v6 = vsel %vm577_vm7, %v417_v25, %v575_v5 }
  0xb5   : > { %579 = vst [vmem:[%s201_s11] sm:$0x3] %v578_v6  ;;  %v582_v8 = vsub.f32 %v581_v39, %v578_v6 }
  0xb6   : > { %915 = shalt.err (!%p912_p13)
}
  0xb7   : > { %770 = dma.vmem_to_hbm [thread:$0]  (%p1096_p9), %s622_s12, 32, %s624_s23, %s593_s25   ;;  %v584_v9 = vmul.f32 %v583_v7, %v582_v8 }
  0xb8   : > { %s588_s20 = scalar_lea.sflag [#allocation7], %s1119_s19  ;;  %s930_s11 = sshra.s32 %s609_s18, 4  ;;  %s931_s11 = int_to_ptr.hbm [resolvable:$true] %s930_s11 }
  0xb9   : > { %v585_v58 = vadd.f32 %v584_v9, %v578_v6  ;;  %s932_s13 = scalar_lea.hbm %s931_s11, 2  ;;  %s936_s29 = scalar_lea.hbm %s1265_s3, 4 }
  0xba   : > { %p933_p0 = scmp.ne.s32.totalorder %s931_s11, %s932_s13  ;;  %p937_p3 = scmp.lt.s32.totalorder %s931_s11, %s1265_s3 }
  0xbb   : > { %586 = vst [vmem:[%s194_s16] sm:$0x3] %v585_v58  ;;  %p938_p4 = scmp.lt.s32.totalorder %s936_s29, %s932_s13 }
  0xbc   : > { %p934_p1 = pnand %p933_p0, %p1096_p9 }
  0xbd   : > { %p939_p5 = por %p938_p4, %p937_p3 }
  0xbe   : > { %p935_p2 = pneg %p934_p1 }
  0xc0   : > { %p940_p6 = pnand %p939_p5, %p935_p2 }
  0xc2   : > { %943 = shalt.err (!%p940_p6)
}
  0xc3   : > { %769 = dma.vmem_to_hbm [thread:$0]  (%p1096_p9), %s607_s17, 32, %s609_s18, %s588_s20  }
  0xc4 PF: > { %s635_s19 = sand.u32 1, %s984_s21   ;;  %p778_p7 = pnand %p741_p12, %p1103_p11 }
  0xc5   : > { %s636_s12 = scalar_lea.sflag [#allocation7], %s635_s19 }
  0xc6   : > { %p779_p8 = pneg %p778_p7 }
  0xc8   : > { %975 = dma.done.wait (%p779_p8), %s636_s12, 32  }
  0xc9   : > { %977 = vsyncadd (%p779_p8), %s636_s12, 4294967264  ;;  %s646_s23 = scalar_lea.sflag [#allocation10], %s635_s19 }
  0xca   : > { %979 = dma.done.wait (%p779_p8), %s646_s23, 32  }
  0xcb   : > { %981 = vsyncadd (%p779_p8), %s646_s23, 4294967264  ;;  %s33_s24 = sadd.s32 1, %s1004_s24   ;;  %s1271_s21 = smov %s988_s22 }
  0xcc   : > { %p30_p10 = scmp.ge.s32.totalorder %s33_s24, 4   ;;  %s1272_s22 = smov %s992_s0 }
  0xcd   : > { %s1273_s0 = smov %s1101_s7  ;;  %s1274_s23 = smov %s1000_s1 }
  0xce   : > { %s1275_s1 = smov %s1277_s27  ;;  %32 = sbr.rel (!%p30_p10) target bundleno = 14 (0xe), region = 86 }
  0xd3   :  { %652 = vsyncpa [#allocation6], 1 }
  0xd4   :  { %654 = vsyncpa [#allocation6 + $0x1], 1 }
  0xd5   :  { %655 = vsyncpa [#allocation7], 1 }
  0xd6   :  { %657 = vsyncpa [#allocation7 + $0x1], 1 }
  0xd7   :  { %658 = vsyncpa [#allocation10], 1 }
  0xd8   :  { %660 = vsyncpa [#allocation10 + $0x1], 1 }

</bundles_post_ra>
